<compile_context>
chip_gen: v6e
topology: v6e:2x2x1
jax: 0.10.0
libtpu: 0.0.40
codegen_flags: <defaults>
</compile_context>

<pallas_src>
import functools

import jax
import jax.numpy as jnp
from jax.experimental import pallas as pl
from jax.experimental.pallas import tpu as pltpu


def _lfd_kernel(x_ref, w1t_ref, b1_ref, w2t_ref, b2_ref, w3t_ref, b3_ref,
                m_ref, yce_ref, yun_ref, e_ref, *, use_mxu):
    x = x_ref[...]                                   # (C, T): channels x pixels

    def linear(w_t_ref, b_ref, inp):
        # w_t: (c_out, c_in), b: (c_out, 1), inp: (c_in, T) -> (c_out, T)
        w_t = w_t_ref[...]
        b = b_ref[...]
        if use_mxu:
            acc = jax.lax.dot_general(
                w_t, inp, (((1,), (0,)), ((), ())),
                preferred_element_type=jnp.float32)
        else:
            # Unrolled broadcast FMAs on the VPU (tiny contraction dim).
            c_in = w_t.shape[1]
            acc = w_t[:, 0:1] * inp[0:1, :]
            for i in range(1, c_in):
                acc = acc + w_t[:, i:i + 1] * inp[i:i + 1, :]
        return acc + b

    h1 = jnp.maximum(linear(w1t_ref, b1_ref, x), 0.0)      # (C,  T)
    h2 = jnp.maximum(linear(w2t_ref, b2_ref, h1), 0.0)     # (Ch, T)
    logit = linear(w3t_ref, b3_ref, h2)                    # (1,  T)
    m = jax.nn.sigmoid(logit)                              # (1,  T)

    # binary entropy with clamp (matches torch clamp(min=eps, max=1-eps))
    eps = 1e-6
    p = jnp.clip(m, eps, 1.0 - eps)
    e = -p * jnp.log(p) - (1.0 - p) * jnp.log(1.0 - p)     # (1, T)
    g = jnp.exp(-e)                                        # (1, T)

    m_ref[...] = m                                         # lane-dense stores
    e_ref[...] = e
    yce_ref[...] = (2.0 * (g - 0.5)) * x                   # (C, T)
    yun_ref[...] = (2.0 * (1.0 - g)) * x                   # (C, T)


def _choose_tile(hw, c, max_tile_s, vmem_budget_bytes):
    """Largest lane tile (multiple of 128) whose double-buffered working set
    (x tile + 4 output tiles) fits a conservative VMEM budget."""
    bytes_per_lane = 4 * (3 * c + 2) * 2          # f32, double-buffered
    cap = max(128, (vmem_budget_bytes // bytes_per_lane) // 128 * 128)
    hw128 = ((hw + 127) // 128) * 128
    return min(max_tile_s, cap, hw128)


def lfd_forward(x_nchw, params, *, max_tile_s=2048):
    """x_nchw: [B, C, H, W] float32.  Returns (M_hat, Y_ce, Y_un, E) in NCHW."""
    B, C, H, W = x_nchw.shape
    Ch = C // 2
    w1, b1, w2, b2, w3, b3 = params          # [in, out] matrices, (1, out) biases

    # Transposed weights / column biases for the channels-on-sublanes layout.
    w1t = jnp.transpose(w1)                  # (C,  C)
    w2t = jnp.transpose(w2)                  # (Ch, C)
    w3t = jnp.transpose(w3)                  # (1,  Ch)
    b1c = jnp.reshape(b1, (C, 1))
    b2c = jnp.reshape(b2, (Ch, 1))
    b3c = jnp.reshape(b3, (1, 1))

    HW = H * W
    tile_s = _choose_tile(HW, C, max_tile_s, vmem_budget_bytes=10 * 1024 * 1024)
    hw_pad = ((HW + tile_s - 1) // tile_s) * tile_s

    x_flat = x_nchw.reshape(B, C, HW)        # free reshape, NO transpose
    if hw_pad != HW:
        x_flat = jnp.pad(x_flat, ((0, 0), (0, 0), (0, hw_pad - HW)))

    grid = (B, hw_pad // tile_s)
    use_mxu = C >= 128                       # tiny C stays on the VPU

    n_pix = B * hw_pad
    cost = pl.CostEstimate(
        flops=int(n_pix * (2 * C * C + 2 * C * Ch + 2 * Ch + 8 * C + 16)),
        transcendentals=int(n_pix * 4),
        bytes_accessed=int(4 * n_pix * (3 * C + 2)),
    )

    kernel = pl.pallas_call(
        functools.partial(_lfd_kernel, use_mxu=use_mxu),
        out_shape=(
            jax.ShapeDtypeStruct((B, 1, hw_pad), jnp.float32),   # M_hat
            jax.ShapeDtypeStruct((B, C, hw_pad), jnp.float32),   # Y_ce
            jax.ShapeDtypeStruct((B, C, hw_pad), jnp.float32),   # Y_un
            jax.ShapeDtypeStruct((B, 1, hw_pad), jnp.float32),   # E
        ),
        grid_spec=pltpu.PrefetchScalarGridSpec(
            num_scalar_prefetch=0,
            grid=grid,
            in_specs=[
                pl.BlockSpec((None, C, tile_s), lambda b, t: (b, 0, t)),  # x
                pl.BlockSpec((C, C), lambda b, t: (0, 0)),                # w1t
                pl.BlockSpec((C, 1), lambda b, t: (0, 0)),                # b1
                pl.BlockSpec((Ch, C), lambda b, t: (0, 0)),               # w2t
                pl.BlockSpec((Ch, 1), lambda b, t: (0, 0)),               # b2
                pl.BlockSpec((1, Ch), lambda b, t: (0, 0)),               # w3t
                pl.BlockSpec((1, 1), lambda b, t: (0, 0)),                # b3
            ],
            out_specs=[
                pl.BlockSpec((None, 1, tile_s), lambda b, t: (b, 0, t)),
                pl.BlockSpec((None, C, tile_s), lambda b, t: (b, 0, t)),
                pl.BlockSpec((None, C, tile_s), lambda b, t: (b, 0, t)),
                pl.BlockSpec((None, 1, tile_s), lambda b, t: (b, 0, t)),
            ],
        ),
        compiler_params=pltpu.CompilerParams(
            dimension_semantics=("parallel", "parallel")),
        cost_estimate=cost,
    )

    m_f, yce_f, yun_f, e_f = kernel(x_flat, w1t, b1c, w2t, b2c, w3t, b3c)

    def unflatten(r, c):
        return r[:, :, :HW].reshape(B, c, H, W)    # free reshape, NO transpose

    return (unflatten(m_f, 1), unflatten(yce_f, C),
            unflatten(yun_f, C), unflatten(e_f, 1))


def init_params(key, in_channels):
    """Deterministic init matching the nn.Conv2d(1x1) weight shapes.

    Conv2d weight [out, in, 1, 1] is stored here as an [in, out] matrix."""
    C = in_channels
    Ch = C // 2
    ks = jax.random.split(key, 6)
    w1 = jax.random.normal(ks[0], (C, C), jnp.float32) * 0.2
    b1 = jax.random.normal(ks[1], (1, C), jnp.float32) * 0.1
    w2 = jax.random.normal(ks[2], (C, Ch), jnp.float32) * 0.2
    b2 = jax.random.normal(ks[3], (1, Ch), jnp.float32) * 0.1
    w3 = jax.random.normal(ks[4], (Ch, 1), jnp.float32) * 0.2
    b3 = jax.random.normal(ks[5], (1, 1), jnp.float32) * 0.1
    return (w1, b1, w2, b2, w3, b3)


def _reference_forward(x_nchw, params):
    """Pure-JAX reference for correctness checking."""
    w1, b1, w2, b2, w3, b3 = params
    B, C, H, W = x_nchw.shape
    xr = jnp.transpose(x_nchw, (0, 2, 3, 1)).reshape(-1, C)
    h1 = jnp.maximum(xr @ w1 + b1, 0.0)
    h2 = jnp.maximum(h1 @ w2 + b2, 0.0)
    m = jax.nn.sigmoid(h2 @ w3 + b3)
    eps = 1e-6
    p = jnp.clip(m, eps, 1.0 - eps)
    e = -p * jnp.log(p) - (1.0 - p) * jnp.log(1.0 - p)
    g = jnp.exp(-e)
    yce = 2.0 * (g - 0.5) * xr
    yun = 2.0 * (1.0 - g) * xr

    def back(r, c):
        return jnp.transpose(r.reshape(B, H, W, c), (0, 3, 1, 2))
    return back(m, 1), back(yce, C), back(yun, C), back(e, 1)


if __name__ == "__main__":
    B, C, H, W = 2, 4, 16, 16
    key = jax.random.PRNGKey(0)
    kx, kp = jax.random.split(key)
    x = jax.random.normal(kx, (B, C, H, W), jnp.float32)
    params = init_params(kp, C)

    outs = jax.block_until_ready(lfd_forward(x, params))
    refs = _reference_forward(x, params)
    for o, r in zip(outs, refs):
        assert o.shape == r.shape
        assert float(jnp.max(jnp.abs(o - r))) < 1e-4

    print("KERNEL_OK")
</pallas_src>

<mosaic_0001>
module attributes {stable_mosaic.version = 11 : i64} {
  func.func @_lfd_kernel(%arg0: i32, %arg1: i32, %arg2: memref<1x4x256xf32, #tpu.memory_space<vmem>>, %arg3: memref<4x4xf32, #tpu.memory_space<vmem>>, %arg4: memref<4x1xf32, #tpu.memory_space<vmem>>, %arg5: memref<2x4xf32, #tpu.memory_space<vmem>>, %arg6: memref<2x1xf32, #tpu.memory_space<vmem>>, %arg7: memref<1x2xf32, #tpu.memory_space<vmem>>, %arg8: memref<1x1xf32, #tpu.memory_space<vmem>>, %arg9: memref<1x1x256xf32, #tpu.memory_space<vmem>>, %arg10: memref<1x4x256xf32, #tpu.memory_space<vmem>>, %arg11: memref<1x4x256xf32, #tpu.memory_space<vmem>>, %arg12: memref<1x1x256xf32, #tpu.memory_space<vmem>>) attributes {dimension_semantics = [#tpu.dimension_semantics<parallel>, #tpu.dimension_semantics<parallel>], iteration_bounds = array<i64: 2, 1>, scalar_prefetch = 0 : i64, scratch_operands = 0 : i64, tpu.core_type = #tpu.core_type<tc>, window_params = [{transform_indices = @transform_0, window_bounds = array<i64: 1, 4, 256>}, {pipeline_mode = #tpu.pipeline_mode<synchronous>, transform_indices = @transform_1, window_bounds = array<i64: 4, 4>}, {pipeline_mode = #tpu.pipeline_mode<synchronous>, transform_indices = @transform_2, window_bounds = array<i64: 4, 1>}, {pipeline_mode = #tpu.pipeline_mode<synchronous>, transform_indices = @transform_3, window_bounds = array<i64: 2, 4>}, {pipeline_mode = #tpu.pipeline_mode<synchronous>, transform_indices = @transform_4, window_bounds = array<i64: 2, 1>}, {pipeline_mode = #tpu.pipeline_mode<synchronous>, transform_indices = @transform_5, window_bounds = array<i64: 1, 2>}, {pipeline_mode = #tpu.pipeline_mode<synchronous>, transform_indices = @transform_6, window_bounds = array<i64: 1, 1>}, {transform_indices = @transform_7, window_bounds = array<i64: 1, 1, 256>}, {transform_indices = @transform_8, window_bounds = array<i64: 1, 4, 256>}, {transform_indices = @transform_9, window_bounds = array<i64: 1, 4, 256>}, {transform_indices = @transform_10, window_bounds = array<i64: 1, 1, 256>}]} {
    %c0 = arith.constant 0 : index
    %c0_0 = arith.constant 0 : index
    %c0_1 = arith.constant 0 : index
    %0 = vector.load %arg2[%c0, %c0_0, %c0_1] : memref<1x4x256xf32, #tpu.memory_space<vmem>>, vector<1x4x256xf32>
    %1 = vector.shape_cast %0 : vector<1x4x256xf32> to vector<4x256xf32>
    %c0_2 = arith.constant 0 : index
    %c0_3 = arith.constant 0 : index
    %2 = vector.load %arg3[%c0_2, %c0_3] : memref<4x4xf32, #tpu.memory_space<vmem>>, vector<4x4xf32>
    %c0_4 = arith.constant 0 : index
    %c0_5 = arith.constant 0 : index
    %3 = vector.load %arg4[%c0_4, %c0_5] : memref<4x1xf32, #tpu.memory_space<vmem>>, vector<4x1xf32>
    %4 = vector.extract_strided_slice %2 {offsets = [0, 0], sizes = [4, 1], strides = [1, 1]} : vector<4x4xf32> to vector<4x1xf32>
    %5 = vector.extract_strided_slice %1 {offsets = [0, 0], sizes = [1, 256], strides = [1, 1]} : vector<4x256xf32> to vector<1x256xf32>
    %6 = vector.broadcast %4 : vector<4x1xf32> to vector<4x256xf32>
    %7 = vector.broadcast %5 : vector<1x256xf32> to vector<4x256xf32>
    %8 = arith.mulf %6, %7 : vector<4x256xf32>
    %9 = vector.extract_strided_slice %2 {offsets = [0, 1], sizes = [4, 1], strides = [1, 1]} : vector<4x4xf32> to vector<4x1xf32>
    %10 = vector.extract_strided_slice %1 {offsets = [1, 0], sizes = [1, 256], strides = [1, 1]} : vector<4x256xf32> to vector<1x256xf32>
    %11 = vector.broadcast %9 : vector<4x1xf32> to vector<4x256xf32>
    %12 = vector.broadcast %10 : vector<1x256xf32> to vector<4x256xf32>
    %13 = arith.mulf %11, %12 : vector<4x256xf32>
    %14 = arith.addf %8, %13 : vector<4x256xf32>
    %15 = vector.extract_strided_slice %2 {offsets = [0, 2], sizes = [4, 1], strides = [1, 1]} : vector<4x4xf32> to vector<4x1xf32>
    %16 = vector.extract_strided_slice %1 {offsets = [2, 0], sizes = [1, 256], strides = [1, 1]} : vector<4x256xf32> to vector<1x256xf32>
    %17 = vector.broadcast %15 : vector<4x1xf32> to vector<4x256xf32>
    %18 = vector.broadcast %16 : vector<1x256xf32> to vector<4x256xf32>
    %19 = arith.mulf %17, %18 : vector<4x256xf32>
    %20 = arith.addf %14, %19 : vector<4x256xf32>
    %21 = vector.extract_strided_slice %2 {offsets = [0, 3], sizes = [4, 1], strides = [1, 1]} : vector<4x4xf32> to vector<4x1xf32>
    %22 = vector.extract_strided_slice %1 {offsets = [3, 0], sizes = [1, 256], strides = [1, 1]} : vector<4x256xf32> to vector<1x256xf32>
    %23 = vector.broadcast %21 : vector<4x1xf32> to vector<4x256xf32>
    %24 = vector.broadcast %22 : vector<1x256xf32> to vector<4x256xf32>
    %25 = arith.mulf %23, %24 : vector<4x256xf32>
    %26 = arith.addf %20, %25 : vector<4x256xf32>
    %27 = vector.broadcast %3 : vector<4x1xf32> to vector<4x256xf32>
    %28 = arith.addf %26, %27 : vector<4x256xf32>
    %cst = arith.constant 0.000000e+00 : f32
    %29 = vector.broadcast %cst : f32 to vector<4x256xf32>
    %30 = arith.maximumf %28, %29 : vector<4x256xf32>
    %c0_6 = arith.constant 0 : index
    %c0_7 = arith.constant 0 : index
    %31 = vector.load %arg5[%c0_6, %c0_7] : memref<2x4xf32, #tpu.memory_space<vmem>>, vector<2x4xf32>
    %c0_8 = arith.constant 0 : index
    %c0_9 = arith.constant 0 : index
    %32 = vector.load %arg6[%c0_8, %c0_9] : memref<2x1xf32, #tpu.memory_space<vmem>>, vector<2x1xf32>
    %33 = vector.extract_strided_slice %31 {offsets = [0, 0], sizes = [2, 1], strides = [1, 1]} : vector<2x4xf32> to vector<2x1xf32>
    %34 = vector.extract_strided_slice %30 {offsets = [0, 0], sizes = [1, 256], strides = [1, 1]} : vector<4x256xf32> to vector<1x256xf32>
    %35 = vector.broadcast %33 : vector<2x1xf32> to vector<2x256xf32>
    %36 = vector.broadcast %34 : vector<1x256xf32> to vector<2x256xf32>
    %37 = arith.mulf %35, %36 : vector<2x256xf32>
    %38 = vector.extract_strided_slice %31 {offsets = [0, 1], sizes = [2, 1], strides = [1, 1]} : vector<2x4xf32> to vector<2x1xf32>
    %39 = vector.extract_strided_slice %30 {offsets = [1, 0], sizes = [1, 256], strides = [1, 1]} : vector<4x256xf32> to vector<1x256xf32>
    %40 = vector.broadcast %38 : vector<2x1xf32> to vector<2x256xf32>
    %41 = vector.broadcast %39 : vector<1x256xf32> to vector<2x256xf32>
    %42 = arith.mulf %40, %41 : vector<2x256xf32>
    %43 = arith.addf %37, %42 : vector<2x256xf32>
    %44 = vector.extract_strided_slice %31 {offsets = [0, 2], sizes = [2, 1], strides = [1, 1]} : vector<2x4xf32> to vector<2x1xf32>
    %45 = vector.extract_strided_slice %30 {offsets = [2, 0], sizes = [1, 256], strides = [1, 1]} : vector<4x256xf32> to vector<1x256xf32>
    %46 = vector.broadcast %44 : vector<2x1xf32> to vector<2x256xf32>
    %47 = vector.broadcast %45 : vector<1x256xf32> to vector<2x256xf32>
    %48 = arith.mulf %46, %47 : vector<2x256xf32>
    %49 = arith.addf %43, %48 : vector<2x256xf32>
    %50 = vector.extract_strided_slice %31 {offsets = [0, 3], sizes = [2, 1], strides = [1, 1]} : vector<2x4xf32> to vector<2x1xf32>
    %51 = vector.extract_strided_slice %30 {offsets = [3, 0], sizes = [1, 256], strides = [1, 1]} : vector<4x256xf32> to vector<1x256xf32>
    %52 = vector.broadcast %50 : vector<2x1xf32> to vector<2x256xf32>
    %53 = vector.broadcast %51 : vector<1x256xf32> to vector<2x256xf32>
    %54 = arith.mulf %52, %53 : vector<2x256xf32>
    %55 = arith.addf %49, %54 : vector<2x256xf32>
    %56 = vector.broadcast %32 : vector<2x1xf32> to vector<2x256xf32>
    %57 = arith.addf %55, %56 : vector<2x256xf32>
    %cst_10 = arith.constant 0.000000e+00 : f32
    %58 = vector.broadcast %cst_10 : f32 to vector<2x256xf32>
    %59 = arith.maximumf %57, %58 : vector<2x256xf32>
    %c0_11 = arith.constant 0 : index
    %c0_12 = arith.constant 0 : index
    %60 = vector.load %arg7[%c0_11, %c0_12] : memref<1x2xf32, #tpu.memory_space<vmem>>, vector<1x2xf32>
    %c0_13 = arith.constant 0 : index
    %c0_14 = arith.constant 0 : index
    %61 = vector.load %arg8[%c0_13, %c0_14] : memref<1x1xf32, #tpu.memory_space<vmem>>, vector<1x1xf32>
    %62 = vector.extract_strided_slice %60 {offsets = [0, 0], sizes = [1, 1], strides = [1, 1]} : vector<1x2xf32> to vector<1x1xf32>
    %63 = vector.extract_strided_slice %59 {offsets = [0, 0], sizes = [1, 256], strides = [1, 1]} : vector<2x256xf32> to vector<1x256xf32>
    %64 = vector.broadcast %62 : vector<1x1xf32> to vector<1x256xf32>
    %65 = arith.mulf %64, %63 : vector<1x256xf32>
    %66 = vector.extract_strided_slice %60 {offsets = [0, 1], sizes = [1, 1], strides = [1, 1]} : vector<1x2xf32> to vector<1x1xf32>
    %67 = vector.extract_strided_slice %59 {offsets = [1, 0], sizes = [1, 256], strides = [1, 1]} : vector<2x256xf32> to vector<1x256xf32>
    %68 = vector.broadcast %66 : vector<1x1xf32> to vector<1x256xf32>
    %69 = arith.mulf %68, %67 : vector<1x256xf32>
    %70 = arith.addf %65, %69 : vector<1x256xf32>
    %71 = vector.broadcast %61 : vector<1x1xf32> to vector<1x256xf32>
    %72 = arith.addf %70, %71 : vector<1x256xf32>
    %73 = arith.negf %72 : vector<1x256xf32>
    %74 = math.exp %73 : vector<1x256xf32>
    %cst_15 = arith.constant 1.000000e+00 : f32
    %75 = vector.broadcast %cst_15 : f32 to vector<1x256xf32>
    %76 = arith.addf %75, %74 : vector<1x256xf32>
    %77 = arith.divf %75, %76 : vector<1x256xf32>
    %cst_16 = arith.constant 9.99999997E-7 : f32
    %cst_17 = arith.constant 0.999998986 : f32
    %78 = vector.broadcast %cst_16 : f32 to vector<1x256xf32>
    %79 = arith.maximumf %78, %77 : vector<1x256xf32>
    %80 = vector.broadcast %cst_17 : f32 to vector<1x256xf32>
    %81 = arith.minimumf %80, %79 : vector<1x256xf32>
    %cst_18 = arith.constant 0.000000e+00 : f32
    %82 = vector.broadcast %cst_18 : f32 to vector<1x256xf32>
    %83 = arith.subf %82, %81 : vector<1x256xf32>
    %84 = math.log %81 : vector<1x256xf32>
    %85 = arith.mulf %83, %84 : vector<1x256xf32>
    %cst_19 = arith.constant 1.000000e+00 : f32
    %86 = vector.broadcast %cst_19 : f32 to vector<1x256xf32>
    %87 = arith.subf %86, %81 : vector<1x256xf32>
    %cst_20 = arith.constant 1.000000e+00 : f32
    %88 = vector.broadcast %cst_20 : f32 to vector<1x256xf32>
    %89 = arith.subf %88, %81 : vector<1x256xf32>
    %90 = math.log %89 : vector<1x256xf32>
    %91 = arith.mulf %87, %90 : vector<1x256xf32>
    %92 = arith.subf %85, %91 : vector<1x256xf32>
    %cst_21 = arith.constant 0.000000e+00 : f32
    %93 = vector.broadcast %cst_21 : f32 to vector<1x256xf32>
    %94 = arith.subf %93, %92 : vector<1x256xf32>
    %95 = math.exp %94 : vector<1x256xf32>
    %c0_22 = arith.constant 0 : index
    %c0_23 = arith.constant 0 : index
    %c0_24 = arith.constant 0 : index
    %96 = vector.load %arg9[%c0_22, %c0_23, %c0_24] : memref<1x1x256xf32, #tpu.memory_space<vmem>>, vector<1x1x256xf32>
    %97 = vector.shape_cast %96 : vector<1x1x256xf32> to vector<1x256xf32>
    %98 = vector.shape_cast %77 : vector<1x256xf32> to vector<1x1x256xf32>
    tpu.vector_store %arg9[%c0_22, %c0_23, %c0_24], %98 {strides = array<i32>} : memref<1x1x256xf32, #tpu.memory_space<vmem>>, vector<1x1x256xf32>,
    %c0_25 = arith.constant 0 : index
    %c0_26 = arith.constant 0 : index
    %c0_27 = arith.constant 0 : index
    %99 = vector.load %arg12[%c0_25, %c0_26, %c0_27] : memref<1x1x256xf32, #tpu.memory_space<vmem>>, vector<1x1x256xf32>
    %100 = vector.shape_cast %99 : vector<1x1x256xf32> to vector<1x256xf32>
    %101 = vector.shape_cast %92 : vector<1x256xf32> to vector<1x1x256xf32>
    tpu.vector_store %arg12[%c0_25, %c0_26, %c0_27], %101 {strides = array<i32>} : memref<1x1x256xf32, #tpu.memory_space<vmem>>, vector<1x1x256xf32>,
    %cst_28 = arith.constant 5.000000e-01 : f32
    %102 = vector.broadcast %cst_28 : f32 to vector<1x256xf32>
    %103 = arith.subf %95, %102 : vector<1x256xf32>
    %cst_29 = arith.constant 2.000000e+00 : f32
    %104 = vector.broadcast %cst_29 : f32 to vector<1x256xf32>
    %105 = arith.mulf %104, %103 : vector<1x256xf32>
    %106 = vector.broadcast %105 : vector<1x256xf32> to vector<4x256xf32>
    %107 = arith.mulf %106, %1 : vector<4x256xf32>
    %c0_30 = arith.constant 0 : index
    %c0_31 = arith.constant 0 : index
    %c0_32 = arith.constant 0 : index
    %108 = vector.load %arg10[%c0_30, %c0_31, %c0_32] : memref<1x4x256xf32, #tpu.memory_space<vmem>>, vector<1x4x256xf32>
    %109 = vector.shape_cast %108 : vector<1x4x256xf32> to vector<4x256xf32>
    %110 = vector.shape_cast %107 : vector<4x256xf32> to vector<1x4x256xf32>
    tpu.vector_store %arg10[%c0_30, %c0_31, %c0_32], %110 {strides = array<i32>} : memref<1x4x256xf32, #tpu.memory_space<vmem>>, vector<1x4x256xf32>,
    %cst_33 = arith.constant 1.000000e+00 : f32
    %111 = vector.broadcast %cst_33 : f32 to vector<1x256xf32>
    %112 = arith.subf %111, %95 : vector<1x256xf32>
    %cst_34 = arith.constant 2.000000e+00 : f32
    %113 = vector.broadcast %cst_34 : f32 to vector<1x256xf32>
    %114 = arith.mulf %113, %112 : vector<1x256xf32>
    %115 = vector.broadcast %114 : vector<1x256xf32> to vector<4x256xf32>
    %116 = arith.mulf %115, %1 : vector<4x256xf32>
    %c0_35 = arith.constant 0 : index
    %c0_36 = arith.constant 0 : index
    %c0_37 = arith.constant 0 : index
    %117 = vector.load %arg11[%c0_35, %c0_36, %c0_37] : memref<1x4x256xf32, #tpu.memory_space<vmem>>, vector<1x4x256xf32>
    %118 = vector.shape_cast %117 : vector<1x4x256xf32> to vector<4x256xf32>
    %119 = vector.shape_cast %116 : vector<4x256xf32> to vector<1x4x256xf32>
    tpu.vector_store %arg11[%c0_35, %c0_36, %c0_37], %119 {strides = array<i32>} : memref<1x4x256xf32, #tpu.memory_space<vmem>>, vector<1x4x256xf32>,
    return
  }
  func.func @transform_0(%arg0: i32, %arg1: i32) -> (i32, i32, i32) {
    %c0_i32 = arith.constant 0 : i32
    %c0_i32_0 = arith.constant 0 : i32
    return %arg0, %c0_i32, %arg1 : i32, i32, i32
  }
  func.func @transform_1(%arg0: i32, %arg1: i32) -> (i32, i32) {
    %c0_i32 = arith.constant 0 : i32
    %c0_i32_0 = arith.constant 0 : i32
    %c0_i32_1 = arith.constant 0 : i32
    return %c0_i32, %c0_i32_0 : i32, i32
  }
  func.func @transform_2(%arg0: i32, %arg1: i32) -> (i32, i32) {
    %c0_i32 = arith.constant 0 : i32
    %c0_i32_0 = arith.constant 0 : i32
    %c0_i32_1 = arith.constant 0 : i32
    return %c0_i32, %c0_i32_0 : i32, i32
  }
  func.func @transform_3(%arg0: i32, %arg1: i32) -> (i32, i32) {
    %c0_i32 = arith.constant 0 : i32
    %c0_i32_0 = arith.constant 0 : i32
    %c0_i32_1 = arith.constant 0 : i32
    return %c0_i32, %c0_i32_0 : i32, i32
  }
  func.func @transform_4(%arg0: i32, %arg1: i32) -> (i32, i32) {
    %c0_i32 = arith.constant 0 : i32
    %c0_i32_0 = arith.constant 0 : i32
    %c0_i32_1 = arith.constant 0 : i32
    return %c0_i32, %c0_i32_0 : i32, i32
  }
  func.func @transform_5(%arg0: i32, %arg1: i32) -> (i32, i32) {
    %c0_i32 = arith.constant 0 : i32
    %c0_i32_0 = arith.constant 0 : i32
    %c0_i32_1 = arith.constant 0 : i32
    return %c0_i32, %c0_i32_0 : i32, i32
  }
  func.func @transform_6(%arg0: i32, %arg1: i32) -> (i32, i32) {
    %c0_i32 = arith.constant 0 : i32
    %c0_i32_0 = arith.constant 0 : i32
    %c0_i32_1 = arith.constant 0 : i32
    return %c0_i32, %c0_i32_0 : i32, i32
  }
  func.func @transform_7(%arg0: i32, %arg1: i32) -> (i32, i32, i32) {
    %c0_i32 = arith.constant 0 : i32
    %c0_i32_0 = arith.constant 0 : i32
    return %arg0, %c0_i32, %arg1 : i32, i32, i32
  }
  func.func @transform_8(%arg0: i32, %arg1: i32) -> (i32, i32, i32) {
    %c0_i32 = arith.constant 0 : i32
    %c0_i32_0 = arith.constant 0 : i32
    return %arg0, %c0_i32, %arg1 : i32, i32, i32
  }
  func.func @transform_9(%arg0: i32, %arg1: i32) -> (i32, i32, i32) {
    %c0_i32 = arith.constant 0 : i32
    %c0_i32_0 = arith.constant 0 : i32
    return %arg0, %c0_i32, %arg1 : i32, i32, i32
  }
  func.func @transform_10(%arg0: i32, %arg1: i32) -> (i32, i32, i32) {
    %c0_i32 = arith.constant 0 : i32
    %c0_i32_0 = arith.constant 0 : i32
    return %arg0, %c0_i32, %arg1 : i32, i32, i32
  }
}

</mosaic_0001>

<bundles_post_ra>
// kernel: tpu_custom_call.1
= control target key start
LH: loop header
LB: loop body
LE: loop exit
PB: predicated region body
PF: predicated region fallthrough
CT: control target
= control target key end

     0   :  { %s1794_s0 = inlined_call_operand.hbm [shape: f32[2,4,256], index: 0, kind: input, shape index: {}]   ;;  %s1795_s1 = inlined_call_operand.vmem [shape: f32[4,4], index: 1, kind: input, shape index: {}]   ;;  %s1796_s2 = inlined_call_operand.vmem [shape: f32[4,1], index: 2, kind: input, shape index: {}]   ;;  %s1797_s3 = inlined_call_operand.vmem [shape: f32[2,4], index: 3, kind: input, shape index: {}]   ;;  %s1798_s4 = inlined_call_operand.vmem [shape: f32[2,1], index: 4, kind: input, shape index: {}]   ;;  %s1799_s5 = inlined_call_operand.vmem [shape: f32[1,2], index: 5, kind: input, shape index: {}]   ;;  %s1800_s6 = inlined_call_operand.<no memory space> [shape: f32[1,1], index: 6, kind: input, shape index: {}]   ;;  %s1801_s7 = inlined_call_operand.hbm [shape: f32[2,1,256], index: 7, kind: output, shape index: {0}]   ;;  %s1802_s8 = inlined_call_operand.hbm [shape: f32[2,4,256], index: 8, kind: output, shape index: {1}]   ;;  %s1803_s9 = inlined_call_operand.hbm [shape: f32[2,4,256], index: 9, kind: output, shape index: {2}]   ;;  %s1804_s10 = inlined_call_operand.hbm [shape: f32[2,1,256], index: 10, kind: output, shape index: {3}]  }
   0x1   :  { %1810 = sst [smem:[#allocation19_spill]] %s1794_s0  ;;  %v16_v0 = vstv %s1800_s6 }
   0x2   :  { %17 = vst [vmem:[#allocation2] sm:$0x1] %v16_v0 }
   0x3   :  { %18 = vsyncpa [#allocation4], 0 }
   0x4   :  { %20 = vsyncpa [#allocation4 + $0x1], 0 }
   0x5   :  { %21 = vsyncpa [#allocation5], 0 }
   0x6   :  { %23 = vsyncpa [#allocation5 + $0x1], 0 }
   0x7   :  { %24 = vsyncpa [#allocation8], 0 }
   0x8   :  { %26 = vsyncpa [#allocation8 + $0x1], 0 }
   0x9   :  { %27 = vsyncpa [#allocation11], 0 }
   0xa   :  { %29 = vsyncpa [#allocation11 + $0x1], 0  ;;  %s1471_s15 = smov 0   ;;  %s1473_s16 = smov 0  }
   0xb   :  { %s1475_s17 = smov 0   ;;  %s1477_s18 = smov 0  }
   0xc   :  { %s1479_s19 = smov 0   ;;  %s1481_s6 = smov 0  }
   0xd LB: > { %1811 = sst [smem:[#allocation16_spill]] %s1381_s15  ;;  %s1502_s20 = sadd.s32 4294967295, %s1401_s6   ;;  %s1401_s6 = sphi %s1481_s6, %s35_s6   ;;  %s1397_s19 = sphi %s1479_s19, %s1834_s19   ;;  %s1393_s18 = sphi %s1477_s18, %s1833_s18   ;;  %s1389_s17 = sphi %s1475_s17, %s1832_s17   ;;  %s1385_s16 = sphi %s1473_s16, %s1831_s16   ;;  %s1381_s15 = sphi %s1471_s15, %s1830_s15  }
   0xe   : > { %s1807_s21 = sadd.s32 4294967294, %s1401_s6   ;;  %s47_s22 = sadd.s32 1, %s1397_s19 }
   0xf   : > { %s56_s23 = sadd.s32 1, %s1389_s17  ;;  %p49_p0 = scmp.ge.s32.totalorder %s47_s22, 2 }
  0x10   : > { %p63_p1 = scmp.ne.s32.totalorder %s1389_s17, %s1385_s16  ;;  %p64_p2 = scmp.eq.s32.totalorder %s1401_s6, 0 }
  0x11   : > { %p69_p3 = scmp.ne.s32.totalorder %s1385_s16, %s1381_s15  ;;  %s1836_s22 = smov (%p49_p0, %s47_s22), 0 }
  0x12   : > { %1812 = sst [smem:[#allocation17_spill]] %s1836_s22  ;;  %p1514_p4 = por %p64_p2, %p63_p1 }
  0x13   : > { %p70_p5 = scmp.eq.s32.totalorder %s1502_s20, 0  ;;  %s51_s25 = ssub.s32 %s1397_s19, %s1836_s22 }
  0x14   : > { %p221_p6 = scmp.eq.s32.totalorder %s1502_s20, 1  ;;  %p54_p7 = scmp.eq.s32.totalorder %s51_s25, 0 }
  0x15   : > { %p1522_p8 = por %p70_p5, %p69_p3  ;;  %p227_p10 = scmp.eq.s32.totalorder %s1807_s21, 1 }
  0x16   : > { %p1526_p9 = por %p221_p6, %p63_p1  ;;  %p1118_p13 = scmp.lt.s32.totalorder %s1401_s6, 2 }
  0x17   : > { %s1533_s28 = scalar_select %p54_p7, %s1389_s17, %s56_s23  }
  0x18   : > { %p1535_p11 = por %p227_p10, %p69_p3  ;;  %s349_s30 = sand.u32 1, %s1389_s17  }
  0x19   : > { %1816 = sst [smem:[#allocation18_spill]] %s1533_s28  ;;  %s1059_s11 = sshll.u32 %s349_s30, 3 }
  0x1a   : > { %s1817_s29 = scalar_select %p1535_p11, 1, 0 }
  0x1b   : > { %s1086_s12 = sshll.u32 %s1397_s19, 7  ;;  %s1818_s0 = sld [smem:[#allocation19_spill]] }
  0x1c   : > { %s353_s22 = scalar_lea.vmem [#allocation3], %s1059_s11  ;;  %p1548_p0 = pnand %p1118_p13, %p1514_p4 }
  0x1d   : > { %s363_s15 = sshll.u32 %s353_s22, 4  ;;  %p1062_p1 = scmp.ge.s32.totalorder %s1401_s6, 1  ;;  %s364_s15 = int_to_ptr.vmem [resolvable:$true] %s363_s15 }
  0x1e   : > { %p368_p2 = scmp.lt.s32.totalorder %s1401_s6, 3  ;;  %s350_s21 = scalar_lea.sflag [#allocation4], %s349_s30 }
  0x1f   : > { %p1209_p3 = pneg %p1548_p0  ;;  %s1220_s28 = scalar_lea.vmem %s364_s15, 128 }
  0x20   : > { %p1221_p5 = scmp.ne.s32.totalorder %s364_s15, %s1220_s28  ;;  %s1403_s13 = smov [#allocation3]  }
  0x21   : > { %s361_s25 = scalar_lea.hbm %s1818_s0, %s1086_s12  ;;  %s1225_s12 = sshll.u32 %s1403_s13, 4  ;;  %s1226_s12 = int_to_ptr.vmem [resolvable:$false] %s1225_s12 }
  0x22   : > { %p1223_p6 = pnand %p1221_p5, %p1209_p3  ;;  %s1227_s22 = scalar_lea.vmem %s1226_s12, 256 }
  0x23   : > { %p1228_p10 = scmp.lt.s32.totalorder %s364_s15, %s1226_s12  ;;  %p1229_p12 = scmp.lt.s32.totalorder %s1227_s22, %s1220_s28 }
  0x24   : > { %p1224_p7 = pneg %p1223_p6 }
  0x25   : > { %p1230_p4 = por %p1229_p12, %p1228_p10 }
  0x27   : > { %p1231_p13 = pnand %p1230_p4, %p1224_p7 }
  0x29   : > { %1234 = shalt.err (!%p1231_p13)
}
  0x2a   : > { %1104 = dma.hbm_to_vmem [thread:$0]  (!%p1548_p0), %s361_s25, 128, %s364_s15, %s350_s21  }
  0x2b   : > { %p369_p11 = pnand %p1062_p1, %p368_p2 }
  0x2c   : > { %s1563_s24 = sand.u32 (!%p369_p11), 1, %s1385_s16  }
  0x2d   : > { %372 = sbr.rel (%p369_p11) target bundleno = 344 (0x158), region = 48  ;;  %s1566_s30 = sshll.u32 (!%p369_p11), %s1563_s24, 3 }
  0x2e   : > { %s375_s28 = scalar_lea.sflag (!%p369_p11), [#allocation4], %s1563_s24  ;;  %s378_s11 = scalar_lea.vmem (!%p369_p11), [#allocation3], %s1566_s30 }
  0x32   : > { %1364 = dma.done.wait (%p1522_p8), %s375_s28, 128  }
  0x33   : > { %1366 = vsyncadd (%p1522_p8), %s375_s28, 4294967168  ;;  %v1404_v1 = vmov 2   ;;  %v1405_v2 = vmov 0   ;;  %v436_v3 = vld [vmem:[%s1795_s1] sm:$0xf]  ;;  %v1406_v4 = vmov 3   ;;  %v444_v11 = vlaneseq }
  0x34   : > { %1175 = vset.pattern.permute.xlu1 %v1404_v1  ;;  %1173 = vset.pattern.permute.xlu0 %v1405_v2  ;;  %v1407_v5 = vmov 1   ;;  %v437_v6 = vld [vmem:[%s1796_s2] sm:$0xf]  ;;  %s1808_s15 = sshll.u32 %s1393_s18, 5  ;;  %s790_s13 = scalar_lea.sflag [#allocation5], %s1563_s24 }
  0x35   : > { %491 = vperm.xlu1 %1175, %v436_v3   ;;  %440 = vperm.xlu0 %1173, %v436_v3   ;;  %v551_v7 = vld [vmem:[%s1797_s3] sm:$0x3]  ;;  %v1590_v12 = vshrl.u32 %v444_v11, 7  ;;  %vm1638_vm0 = vcmp.lt.s32.totalorder %v444_v11, 256  ;;  %s1648_s23 = scalar_lea.hbm %s1801_s7, %s1808_s15  ;;  %s1409_s22 = smov [#allocation6]  }
  0x36   : > { %v625_v8 = vld [vmem:[%s1799_s5] sm:$0x1]  ;;  %v1600_v17 = vld [vmem:[%s378_s11] sm:$0xff]  ;;  %s1809_s11 = sshll.u32 %s1563_s24, 1  ;;  %s1239_s28 = sshll.u32 %s1409_s22, 4  ;;  %s1240_s28 = int_to_ptr.vmem [resolvable:$false] %s1239_s28 }
  0x37   : > { %v552_v9 = vld [vmem:[%s1798_s4] sm:$0x3]  ;;  %v1593_v13 = vsub.s32 0, %v1590_v12  ;;  %v450_v14 = vsub.s32 4, %v1590_v12  ;;  %v470_v15 = vsub.s32 1, %v1590_v12  ;;  %v474_v16 = vsub.s32 5, %v1590_v12 }
  0x38   : > { %v626_v10 = vld [vmem:[#allocation2] sm:$0x1]  ;;  %v496_v18 = vsub.s32 2, %v1590_v12  ;;  %v500_v19 = vsub.s32 6, %v1590_v12  ;;  %v1605_v20 = vsub.s32 3, %v1590_v12  ;;  %v526_v21 = vsub.s32 7, %v1590_v12 }
  0x39   : > { %1176 = vset.pattern.permute.xlu1 %v1406_v4  ;;  %1174 = vset.pattern.permute.xlu0 %v1407_v5  ;;  %v447_v22 = vrot.slane %v1600_v17, %v1593_v13  ;;  %v451_v23 = vrot.slane %v1600_v17, %v450_v14  ;;  %v471_v24 = vrot.slane %v1600_v17, %v470_v15  ;;  %s408_s21 = scalar_lea.vmem [#allocation6], %s1809_s11  ;;  %s1241_s25 = scalar_lea.vmem %s1240_s28, 64 }
  0x3a   : > { %517 = vperm.xlu1 %1176, %v436_v3   ;;  %465 = vperm.xlu0 %1174, %v436_v3   ;;  %v475_v25 = vrot.slane %v1600_v17, %v474_v16  ;;  %v497_v27 = vrot.slane %v1600_v17, %v496_v18  ;;  %v501_v28 = vrot.slane %v1600_v17, %v500_v19  ;;  %s821_s14 = sshll.u32 %s408_s21, 4  ;;  %s1650_s14 = int_to_ptr.vmem [resolvable:$true] %s821_s14 }
  0x3b   : > { %v523_v30 = vrot.slane %v1600_v17, %v1605_v20  ;;  %v527_v31 = vrot.slane %v1600_v17, %v526_v21  ;;  %v457_v32 = vrot.slane %v447_v22, %v1593_v13  ;;  %v461_v33 = vrot.slane %v451_v23, %v1593_v13  ;;  %s1235_s12 = scalar_lea.vmem %s1650_s14, 32  ;;  %p1242_p0 = scmp.lt.s32.totalorder %s1650_s14, %s1240_s28 }
  0x3c   : > { %v481_v34 = vrot.slane %v471_v24, %v470_v15  ;;  %v485_v35 = vrot.slane %v475_v25, %v470_v15  ;;  %v507_v36 = vrot.slane %v497_v27, %v496_v18  ;;  %v511_v37 = vrot.slane %v501_v28, %v496_v18  ;;  %p1236_p8 = scmp.ne.s32.totalorder %s1650_s14, %s1235_s12  ;;  %p1243_p1 = scmp.lt.s32.totalorder %s1241_s25, %s1235_s12 }
  0x3d   : > { %v533_v39 = vrot.slane %v523_v30, %v1605_v20  ;;  %v537_v40 = vrot.slane %v527_v31, %v1605_v20 }
  0x3e   : > { %1177 = vset.pattern.permute.xlu1 %v1405_v2  ;;  %1178 = vset.pattern.permute.xlu0 %v1405_v2  ;;  %p1237_p11 = pnand %p1236_p8, %p1526_p9  ;;  %p1244_p2 = por %p1243_p1, %p1242_p0 }
  0x3f   : > { %544 = vperm.xlu1 %1177, %v437_v6   ;;  %555 = vperm.xlu0 %1178, %v551_v7  }
  0x40   : > { %p1238_p12 = pneg %p1237_p11 }
  0x42   : > { %p1245_p3 = pnand %p1244_p2, %p1238_p12 }
  0x43   : > { %1179 = vset.pattern.permute.xlu1 %v1407_v5  ;;  %1181 = vset.pattern.permute.xlu0 %v1406_v4 }
  0x44   : > { %569 = vperm.xlu1 %1179, %v551_v7   ;;  %601 = vperm.xlu0 %1181, %v551_v7  }
  0x48   : > { %1180 = vset.pattern.permute.xlu1 %v1404_v1  ;;  %1184 = vset.pattern.permute.xlu0 %v1405_v2 }
  0x49   : > { %585 = vperm.xlu1 %1180, %v551_v7   ;;  %629 = vperm.xlu0 %1184, %v625_v8  }
  0x4d   : > { %1182 = vset.pattern.permute.xlu1 %v1405_v2 }
  0x4e   : > { %618 = vperm.xlu1 %1182, %v552_v9  }
  0x52   : > { %1183 = vset.pattern.permute.xlu1 %v1407_v5 }
  0x53   : > { %639 = vperm.xlu1 %1183, %v625_v8  }
  0x57   : > { %1185 = vset.pattern.permute.xlu1 %v1405_v2 }
  0x58   : > { %658 = vperm.xlu1 %1185, %v626_v10  }
  0xb0   : > { %v492_v26 = vpop.permute.xlu1 %491  ;;  %v441_v29 = vpop.permute.xlu0 %440 }
  0xb1   : > { %v462_v42 = vmul.f32 %v457_v32, %v441_v29  ;;  %v463_v43 = vmul.f32 %v461_v33, %v441_v29  ;;  %v512_v46 = vmul.f32 %v507_v36, %v492_v26  ;;  %v513_v47 = vmul.f32 %v511_v37, %v492_v26 }
  0xb5   : > { %v518_v38 = vpop.permute.xlu1 %517  ;;  %v466_v41 = vpop.permute.xlu0 %465 }
  0xb6   : > { %v486_v44 = vmul.f32 %v481_v34, %v466_v41  ;;  %v487_v45 = vmul.f32 %v485_v35, %v466_v41  ;;  %v538_v50 = vmul.f32 %v533_v39, %v518_v38  ;;  %v539_v51 = vmul.f32 %v537_v40, %v518_v38 }
  0xb8   : > { %v488_v48 = vadd.f32 %v486_v44, %v462_v42  ;;  %v489_v49 = vadd.f32 %v487_v45, %v463_v43 }
  0xba   : > { %v545_v52 = vpop.permute.xlu1 %544  ;;  %v514_v53 = vadd.f32 %v512_v46, %v488_v48  ;;  %v515_v54 = vadd.f32 %v513_v47, %v489_v49  ;;  %v556_v60 = vpop.permute.xlu0 %555 }
  0xbc   : > { %v540_v55 = vadd.f32 %v538_v50, %v514_v53  ;;  %v541_v56 = vadd.f32 %v539_v51, %v515_v54  ;;  %v1408_v54 = vmov 1966171168  }
  0xbe   : > { %v547_v57 = vadd.f32 %v545_v52, %v540_v55  ;;  %v548_v58 = vadd.f32 %v545_v52, %v541_v56  ;;  %v711_v55 = vunpack.c.l.s4 %v1408_v54 }
  0xbf   : > { %v570_v59 = vpop.permute.xlu1 %569  ;;  %v602_v16 = vpop.permute.xlu0 %601 }
  0xc0   : > { %v549_v61 = vmax.f32 %v547_v57, 0.0  ;;  %v550_v62 = vmax.f32 %v548_v58, 0.0  ;;  %v712_v56 = vunpack.c.0.s8 %v711_v55 }
  0xc2   : > { %v575_v63 = vrot.slane %v549_v61, %v470_v15  ;;  %v579_v0 = vrot.slane %v550_v62, %v470_v15  ;;  %v561_v1 = vrot.slane %v549_v61, %v1593_v13  ;;  %v565_v2 = vrot.slane %v550_v62, %v1593_v13 }
  0xc3   : > { %v607_v3 = vrot.slane %v549_v61, %v1605_v20  ;;  %v611_v4 = vrot.slane %v550_v62, %v1605_v20  ;;  %v591_v5 = vrot.slane %v549_v61, %v496_v18  ;;  %v595_v6 = vrot.slane %v550_v62, %v496_v18 }
  0xc4   : > { %v580_v7 = vmul.f32 %v575_v63, %v570_v59  ;;  %v581_v8 = vmul.f32 %v579_v0, %v570_v59  ;;  %v566_v9 = vmul.f32 %v561_v1, %v556_v60  ;;  %v567_v10 = vmul.f32 %v565_v2, %v556_v60  ;;  %v586_v14 = vpop.permute.xlu1 %585  ;;  %v630_v18 = vpop.permute.xlu0 %629 }
  0xc5   : > { %v596_v19 = vmul.f32 %v591_v5, %v586_v14  ;;  %v597_v21 = vmul.f32 %v595_v6, %v586_v14  ;;  %v612_v23 = vmul.f32 %v607_v3, %v602_v16  ;;  %v613_v24 = vmul.f32 %v611_v4, %v602_v16 }
  0xc6   : > { %v582_v22 = vadd.f32 %v580_v7, %v566_v9  ;;  %v583_v15 = vadd.f32 %v581_v8, %v567_v10  ;;  %v635_v34 = vrot.slane %v630_v18, %v1593_v13  ;;  %v1631_v58 = vsub.s32 %v712_v56, %v1590_v12 }
  0xc8   : > { %v598_v25 = vadd.f32 %v596_v19, %v582_v22  ;;  %v599_v26 = vadd.f32 %v597_v21, %v583_v15 }
  0xc9   : > { %v619_v27 = vpop.permute.xlu1 %618 }
  0xca   : > { %v614_v28 = vadd.f32 %v612_v23, %v598_v25  ;;  %v615_v29 = vadd.f32 %v613_v24, %v599_v26 }
  0xcc   : > { %v621_v20 = vadd.f32 %v619_v27, %v614_v28  ;;  %v622_v30 = vadd.f32 %v619_v27, %v615_v29 }
  0xce   : > { %v623_v31 = vmax.f32 %v621_v20, 0.0  ;;  %v624_v32 = vmax.f32 %v622_v30, 0.0  ;;  %v640_v33 = vpop.permute.xlu1 %639 }
  0xcf   : > { %v645_v35 = vrot.slane %v640_v33, %v1593_v13 }
  0xd0   : > { %v636_v38 = vmul.f32 %v635_v34, %v623_v31  ;;  %v637_v39 = vmul.f32 %v635_v34, %v624_v32 }
  0xd1   : > { %v646_v36 = vmul.f32 %v645_v35, %v623_v31  ;;  %v647_v37 = vmul.f32 %v645_v35, %v624_v32 }
  0xd3   : > { %v650_v40 = vrot.slane %v646_v36, 1  ;;  %v651_v41 = vrot.slane %v647_v37, 1  ;;  %v659_v42 = vpop.permute.xlu1 %658 }
  0xd4   : > { %v664_v43 = vrot.slane %v659_v42, %v1593_v13 }
  0xd5   : > { %v654_v44 = vadd.f32 %v650_v40, %v636_v38  ;;  %v655_v45 = vadd.f32 %v651_v41, %v637_v39 }
  0xd7   : > { %v665_v46 = vadd.f32 %v664_v43, %v654_v44  ;;  %v666_v47 = vadd.f32 %v664_v43, %v655_v45 }
  0xd9   : > { %v1068_v48 = vmul.f32 -1.442695, %v665_v46  ;;  %v1069_v49 = vmul.f32 -1.442695, %v666_v47 }
  0xdb   : > { %1187 = vpow2.f32 %v1068_v48 }
  0xdc   : > { %1189 = vpow2.f32 %v1069_v49 }
  0xe8   : > { %v1188_v50 = vpop.eup %1187 }
  0xe9   : > { %v1190_v51 = vpop.eup %1189  ;;  %v673_v52 = vadd.f32 1.0, %v1188_v50 }
  0xea   : > { %v674_v53 = vadd.f32 1.0, %v1190_v51 }
  0xeb   : > { %1191 = vrcp.f32 %v673_v52 }
  0xec   : > { %1193 = vrcp.f32 %v674_v53 }
  0xf8   : > { %v1192_v57 = vpop.eup %1191 }
  0xf9   : > { %v1194_v59 = vpop.eup %1193  ;;  %v679_v60 = vmax.f32 %v1192_v57, 1e-06 }
  0xfa   : > { %v680_v61 = vmax.f32 %v1194_v59, 1e-06  ;;  %v709_v62 = vcombine.low %v1192_v57, %v1194_v59 }
  0xfb   : > { %v681_v63 = vmin.f32 %v679_v60, 0.999999 }
  0xfc   : > { %v682_v0 = vmin.f32 %v680_v61, 0.999999  ;;  %v716_v1 = vrot.slane %v709_v62, %v1631_v58 }
  0xfd   : > { %1195 = vlog2.f32 %v681_v63  ;;  %v691_v2 = vsub.f32 1.0, %v681_v63 }
  0xfe   : > { %1197 = vlog2.f32 %v682_v0  ;;  %v692_v3 = vsub.f32 1.0, %v682_v0  ;;  %v723_v4 = vrot.slane %v716_v1, %v1631_v58 }
  0xff   : > { %1199 = vlog2.f32 %v691_v2 }
 0x100   : > { %1201 = vlog2.f32 %v692_v3  ;;  %729 = vst.msk [vmem:[%s408_s21] sm:$0x3] %vm1638_vm0, %v723_v4 }
 0x101   : > { %1248 = shalt.err (!%p1245_p3)
}
 0x102   : > { %s1249_s21 = scalar_lea.hbm %s1648_s23, 32  ;;  %s1253_s22 = scalar_lea.hbm %s1801_s7, 64 }
 0x103   : > { %p1250_p5 = scmp.ne.s32.totalorder %s1648_s23, %s1249_s21  ;;  %p1254_p10 = scmp.lt.s32.totalorder %s1648_s23, %s1801_s7 }
 0x104   : > { %p1255_p4 = scmp.lt.s32.totalorder %s1253_s22, %s1249_s21 }
 0x105   : > { %p1251_p6 = pnand %p1250_p5, %p1526_p9 }
 0x106   : > { %p1256_p13 = por %p1255_p4, %p1254_p10 }
 0x107   : > { %p1252_p7 = pneg %p1251_p6 }
 0x109   : > { %p1257_p8 = pnand %p1256_p13, %p1252_p7 }
 0x10b   : > { %1260 = shalt.err (!%p1257_p8)
}
 0x10c   : > { %1093 = dma.vmem_to_hbm [thread:$0]  (%p1526_p9), %s1650_s14, 32, %s1648_s23, %s790_s13   ;;  %v1196_v11 = vpop.eup %1195  ;;  %v683_v10 = vsub.f32 0.0, %v681_v63  ;;  %v684_v16 = vsub.f32 0.0, %v682_v0 }
 0x10d   : > { %v1198_v5 = vpop.eup %1197  ;;  %v686_v6 = vmul.f32 0.6931472, %v1196_v11  ;;  %s1822_s0 = sshll.u32 %s1563_s24, 1  ;;  %s1823_s14 = sshll.u32 %s1393_s18, 5 }
 0x10e   : > { %v1200_v7 = vpop.eup %1199  ;;  %v688_v8 = vmul.f32 0.6931472, %v1198_v5  ;;  %s429_s11 = scalar_lea.vmem [#allocation10], %s1822_s0  ;;  %s867_s12 = scalar_lea.hbm %s1804_s10, %s1823_s14 }
 0x10f   : > { %v1202_v9 = vpop.eup %1201  ;;  %v694_v14 = vmul.f32 0.6931472, %v1200_v7  ;;  %v689_v21 = vmul.f32 %v686_v6, %v683_v10  ;;  %s869_s15 = sshll.u32 %s429_s11, 4  ;;  %s805_s28 = scalar_lea.sflag [#allocation11], %s1563_s24  ;;  %s870_s15 = int_to_ptr.vmem [resolvable:$true] %s869_s15 }
 0x110   : > { %v696_v19 = vmul.f32 0.6931472, %v1202_v9  ;;  %v690_v15 = vmul.f32 %v688_v8, %v684_v16  ;;  %s1261_s25 = scalar_lea.vmem %s870_s15, 32  ;;  %s1410_s21 = smov [#allocation10]  }
 0x111   : > { %v697_v22 = vmul.f32 %v694_v14, %v691_v2  ;;  %p1262_p11 = scmp.ne.s32.totalorder %s870_s15, %s1261_s25  ;;  %s1265_s26 = sshll.u32 %s1410_s21, 4  ;;  %s1266_s26 = int_to_ptr.vmem [resolvable:$false] %s1265_s26 }
 0x112   : > { %v698_v23 = vmul.f32 %v696_v19, %v692_v3  ;;  %s1267_s22 = scalar_lea.vmem %s1266_s26, 64  ;;  %p1268_p1 = scmp.lt.s32.totalorder %s870_s15, %s1266_s26 }
 0x113   : > { %v699_v24 = vsub.f32 %v689_v21, %v697_v22  ;;  %p1263_p12 = pnand %p1262_p11, %p1526_p9  ;;  %p1269_p2 = scmp.lt.s32.totalorder %s1267_s22, %s1261_s25 }
 0x114   : > { %v700_v25 = vsub.f32 %v690_v15, %v698_v23 }
 0x115   : > { %v701_v26 = vsub.f32 0.0, %v699_v24  ;;  %p1264_p0 = pneg %p1263_p12  ;;  %p1270_p3 = por %p1269_p2, %p1268_p1 }
 0x116   : > { %v702_v27 = vsub.f32 0.0, %v700_v25  ;;  %v732_v28 = vcombine.low %v699_v24, %v700_v25 }
 0x117   : > { %v703_v29 = vmul.f32 1.442695, %v701_v26  ;;  %p1271_p5 = pnand %p1270_p3, %p1264_p0 }
 0x118   : > { %v705_v20 = vmul.f32 1.442695, %v702_v27  ;;  %v739_v30 = vrot.slane %v732_v28, %v1631_v58 }
 0x119   : > { %1203 = vpow2.f32 %v703_v29 }
 0x11a   : > { %1205 = vpow2.f32 %v705_v20  ;;  %v746_v18 = vrot.slane %v739_v30, %v1631_v58 }
 0x11c   : > { %748 = vst.msk [vmem:[%s429_s11] sm:$0x3] %vm1638_vm0, %v746_v18 }
 0x11d   : > { %1274 = shalt.err (!%p1271_p5)
}
 0x11e   : > { %s1275_s0 = scalar_lea.hbm %s867_s12, 32  ;;  %s1279_s14 = scalar_lea.hbm %s1804_s10, 64 }
 0x11f   : > { %p1276_p6 = scmp.ne.s32.totalorder %s867_s12, %s1275_s0  ;;  %p1280_p4 = scmp.lt.s32.totalorder %s867_s12, %s1804_s10 }
 0x120   : > { %p1281_p13 = scmp.lt.s32.totalorder %s1279_s14, %s1275_s0 }
 0x121   : > { %p1277_p7 = pnand %p1276_p6, %p1526_p9 }
 0x122   : > { %p1282_p8 = por %p1281_p13, %p1280_p4 }
 0x123   : > { %p1278_p10 = pneg %p1277_p7 }
 0x125   : > { %p1283_p11 = pnand %p1282_p8, %p1278_p10 }
 0x127   : > { %1286 = shalt.err (!%p1283_p11)
}
 0x128   : > { %1096 = dma.vmem_to_hbm [thread:$0]  (%p1526_p9), %s870_s15, 32, %s867_s12, %s805_s28   ;;  %v1204_v31 = vpop.eup %1203  ;;  %v761_v40 = vcombine.high %v1600_v17, %v1600_v17 }
 0x129   : > { %v1206_v32 = vpop.eup %1205  ;;  %v1070_v33 = vadd.f32 -0.5, %v1204_v31  ;;  %v770_v34 = vsub.f32 1.0, %v1204_v31  ;;  %s794_s15 = sand.u32 1, %s1502_s20   ;;  %s1088_s12 = sshll.u32 %s1393_s18, 7 }
 0x12a   : > { %v1071_v35 = vadd.f32 -0.5, %v1206_v32  ;;  %v771_v36 = vsub.f32 1.0, %v1206_v32  ;;  %s415_s28 = scalar_lea.vmem [#allocation7], %s1566_s30  ;;  %s422_s21 = scalar_lea.vmem [#allocation9], %s1566_s30 }
 0x12b   : > { %v751_v37 = vmul.f32 2.0, %v1070_v33  ;;  %v772_v38 = vmul.f32 2.0, %v770_v34  ;;  %s837_s25 = sshll.u32 %s415_s28, 4  ;;  %s853_s26 = sshll.u32 %s422_s21, 4  ;;  %s1716_s25 = int_to_ptr.vmem [resolvable:$true] %s837_s25  ;;  %s1723_s26 = int_to_ptr.vmem [resolvable:$true] %s853_s26 }
 0x12c   : > { %v752_v39 = vmul.f32 2.0, %v1071_v35  ;;  %v773_v41 = vmul.f32 2.0, %v771_v36  ;;  %s1714_s24 = scalar_lea.hbm %s1802_s8, %s1088_s12  ;;  %s1721_s11 = scalar_lea.hbm %s1803_s9, %s1088_s12 }
 0x12d   : > { %v756_v42 = vrot.slane %v751_v37, %v1593_v13  ;;  %v777_v43 = vrot.slane %v772_v38, %v1593_v13  ;;  %s1725_s30 = scalar_lea.sflag [#allocation8], %s794_s15  ;;  %s1287_s14 = scalar_lea.vmem %s1716_s25, 128 }
 0x12e   : > { %v760_v44 = vrot.slane %v752_v39, %v1593_v13  ;;  %v781_v45 = vrot.slane %v773_v41, %v1593_v13  ;;  %p1288_p12 = scmp.ne.s32.totalorder %s1716_s25, %s1287_s14  ;;  %s1411_s23 = smov [#allocation7]  }
 0x12f   : > { %v763_v46 = vmul.f32 %v756_v42, %v1600_v17  ;;  %v782_v47 = vmul.f32 %v777_v43, %v1600_v17  ;;  %s1291_s13 = sshll.u32 %s1411_s23, 4  ;;  %s1292_s13 = int_to_ptr.vmem [resolvable:$false] %s1291_s13 }
 0x130   : > { %v764_v48 = vmul.f32 %v761_v40, %v760_v44  ;;  %v783_v49 = vmul.f32 %v781_v45, %v761_v40  ;;  %p1289_p0 = pnand %p1288_p12, %p1526_p9  ;;  %s1293_s22 = scalar_lea.vmem %s1292_s13, 256 }
 0x131   : > { %p1294_p2 = scmp.lt.s32.totalorder %s1716_s25, %s1292_s13  ;;  %p1295_p3 = scmp.lt.s32.totalorder %s1293_s22, %s1287_s14 }
 0x132   : > { %v767_v50 = vcombine.low %v763_v46, %v764_v48  ;;  %v786_v13 = vcombine.low %v782_v47, %v783_v49  ;;  %p1290_p1 = pneg %p1289_p0 }
 0x133   : > { %p1296_p5 = por %p1295_p3, %p1294_p2 }
 0x134   : > { %769 = vst [vmem:[%s415_s28] sm:$0xff] %v767_v50  ;;  %788 = vst [vmem:[%s422_s21] sm:$0xff] %v786_v13 }
 0x135   : > { %p1297_p6 = pnand %p1296_p5, %p1290_p1 }
 0x137   : > { %1300 = shalt.err (!%p1297_p6)
}
 0x138   : > { %s1301_s15 = scalar_lea.hbm %s1714_s24, 128  ;;  %s1305_s21 = scalar_lea.hbm %s1802_s8, 256 }
 0x139   : > { %p1302_p7 = scmp.ne.s32.totalorder %s1714_s24, %s1301_s15  ;;  %p1306_p13 = scmp.lt.s32.totalorder %s1714_s24, %s1802_s8 }
 0x13a   : > { %p1307_p8 = scmp.lt.s32.totalorder %s1305_s21, %s1301_s15 }
 0x13b   : > { %p1303_p10 = pnand %p1302_p7, %p1526_p9 }
 0x13c   : > { %p1308_p11 = por %p1307_p8, %p1306_p13 }
 0x13d   : > { %p1304_p4 = pneg %p1303_p10 }
 0x13f   : > { %p1309_p12 = pnand %p1308_p11, %p1304_p4 }
 0x141   : > { %1312 = shalt.err (!%p1309_p12)
}
 0x142   : > { %1094 = dma.vmem_to_hbm [thread:$0]  (%p1526_p9), %s1716_s25, 128, %s1714_s24, %s1725_s30  }
 0x143   : > { %s1313_s20 = scalar_lea.vmem %s1723_s26, 128  ;;  %s1412_s14 = smov [#allocation9]  }
 0x144   : > { %p1314_p0 = scmp.ne.s32.totalorder %s1723_s26, %s1313_s20  ;;  %s1317_s23 = sshll.u32 %s1412_s14, 4  ;;  %s1318_s23 = int_to_ptr.vmem [resolvable:$false] %s1317_s23 }
 0x145   : > { %s1319_s13 = scalar_lea.vmem %s1318_s23, 256  ;;  %p1320_p3 = scmp.lt.s32.totalorder %s1723_s26, %s1318_s23 }
 0x146   : > { %p1315_p1 = pnand %p1314_p0, %p1526_p9  ;;  %p1321_p5 = scmp.lt.s32.totalorder %s1319_s13, %s1313_s20 }
 0x148   : > { %p1316_p2 = pneg %p1315_p1  ;;  %p1322_p6 = por %p1321_p5, %p1320_p3 }
 0x14a   : > { %p1323_p7 = pnand %p1322_p6, %p1316_p2 }
 0x14c   : > { %1326 = shalt.err (!%p1323_p7)
}
 0x14d   : > { %s1327_s22 = scalar_lea.hbm %s1721_s11, 128  ;;  %s1331_s15 = scalar_lea.hbm %s1803_s9, 256 }
 0x14e   : > { %p1328_p10 = scmp.ne.s32.totalorder %s1721_s11, %s1327_s22  ;;  %p1332_p8 = scmp.lt.s32.totalorder %s1721_s11, %s1803_s9 }
 0x14f   : > { %p1333_p11 = scmp.lt.s32.totalorder %s1331_s15, %s1327_s22 }
 0x150   : > { %p1329_p4 = pnand %p1328_p10, %p1526_p9 }
 0x151   : > { %p1334_p12 = por %p1333_p11, %p1332_p8 }
 0x152   : > { %p1330_p13 = pneg %p1329_p4 }
 0x154   : > { %p1335_p0 = pnand %p1334_p12, %p1330_p13 }
 0x156   : > { %1338 = shalt.err (!%p1335_p0)
}
 0x157   : > { %1095 = dma.vmem_to_hbm [thread:$0]  (%p1526_p9), %s1723_s26, 128, %s1721_s11, %s1725_s30  }
 0x158 PF: > { %s1824_s21 = sld [smem:[#allocation16_spill]]  ;;  %p1825_p1 = scmp.ne.s32.totalorder %s1817_s29, 0 }
 0x159   : > { %p1826_p2 = scmp.ge.s32.totalorder %s1401_s6, 2 }
 0x15b   : > { %p1106_p3 = pnand %p1826_p2, %p1825_p1 }
 0x15d   : > { %p1107_p5 = pneg %p1106_p3 }
 0x15e   : > { %s881_s0 = sand.u32 1, %s1824_s21  }
 0x15f   : > { %s882_s18 = scalar_lea.sflag [#allocation5], %s881_s0 }
 0x160   : > { %1368 = dma.done.wait (%p1107_p5), %s882_s18, 32  }
 0x161   : > { %1370 = vsyncadd (%p1107_p5), %s882_s18, 4294967264  ;;  %s1827_s20 = sadd.s32 4294967294, %s1401_s6  }
 0x162   : > { %s890_s14 = sand.u32 1, %s1827_s20  }
 0x163   : > { %s891_s27 = scalar_lea.sflag [#allocation8], %s890_s14 }
 0x164   : > { %1372 = dma.done.wait (%p1107_p5), %s891_s27, 256  }
 0x165   : > { %1374 = vsyncadd (%p1107_p5), %s891_s27, 4294967040  ;;  %s909_s23 = scalar_lea.sflag [#allocation11], %s881_s0 }
 0x166   : > { %1376 = dma.done.wait (%p1107_p5), %s909_s23, 32  }
 0x167   : > { %1378 = vsyncadd (%p1107_p5), %s909_s23, 4294967264  ;;  %s35_s6 = sadd.s32 1, %s1401_s6   ;;  %s1828_s29 = sld [smem:[#allocation18_spill]] }
 0x168   : > { %p32_p9 = scmp.ge.s32.totalorder %s35_s6, 4   ;;  %s1829_s26 = sld [smem:[#allocation17_spill]] }
 0x169   : > { %s1830_s15 = smov %s1385_s16  ;;  %s1831_s16 = smov %s1389_s17 }
 0x16a   : > { %s1833_s18 = smov %s1397_s19  ;;  %34 = sbr.rel (!%p32_p9) target bundleno = 13 (0xd), region = 142 }
 0x16d   : > { %s1832_s17 = smov %s1828_s29 }
 0x16e   : > { %s1834_s19 = smov %s1829_s26 }
 0x16f   :  { %914 = vsyncpa [#allocation4], 1 }
 0x170   :  { %916 = vsyncpa [#allocation4 + $0x1], 1 }
 0x171   :  { %917 = vsyncpa [#allocation5], 1 }
 0x172   :  { %919 = vsyncpa [#allocation5 + $0x1], 1 }
 0x173   :  { %920 = vsyncpa [#allocation8], 1 }
 0x174   :  { %922 = vsyncpa [#allocation8 + $0x1], 1 }
 0x175   :  { %923 = vsyncpa [#allocation11], 1 }
 0x176   :  { %925 = vsyncpa [#allocation11 + $0x1], 1 }

</bundles_post_ra>
